<compile_context>
chip_gen: v6e
topology: v6e:2x2x1
jax: 0.10.0
libtpu: 0.0.40
codegen_flags: <defaults>
</compile_context>

<pallas_src>
import functools
import math

import jax
import jax.numpy as jnp
from jax.experimental import pallas as pl
from jax.experimental.pallas import tpu as pltpu


def _fused_attention_kernel(xq_ref, xkv_ref, wq_ref, wk_ref, wv_ref,
                            bq_ref, bk_ref, bv_ref, o_ref,
                            q_scratch, m_scratch, l_scratch, acc_scratch,
                            *, scale_inv, compute_dtype):
    ki = pl.program_id(2)
    contract_last = (((1,), (1,)), ((), ()))   # contract last dim of both operands

    @pl.when(ki == 0)
    def _init():
        # Project Q once per (batch, q-tile); fold 1/sqrt(C) into Q here.
        xq = xq_ref[0].astype(compute_dtype)                         # (TQ, C)
        q = jax.lax.dot_general(xq, wq_ref[...].astype(compute_dtype),
                                contract_last,
                                preferred_element_type=jnp.float32)  # x @ Wq^T
        q = (q + bq_ref[...]) * scale_inv
        q_scratch[...] = q.astype(compute_dtype)
        m_scratch[...] = jnp.full_like(m_scratch, -jnp.inf)
        l_scratch[...] = jnp.zeros_like(l_scratch)
        acc_scratch[...] = jnp.zeros_like(acc_scratch)

    # Project K/V for this KV tile.
    xkv = xkv_ref[0].astype(compute_dtype)                            # (TK, C)
    k = jax.lax.dot_general(xkv, wk_ref[...].astype(compute_dtype),
                            contract_last,
                            preferred_element_type=jnp.float32) + bk_ref[...]
    v = jax.lax.dot_general(xkv, wv_ref[...].astype(compute_dtype),
                            contract_last,
                            preferred_element_type=jnp.float32) + bv_ref[...]

    # Scores: Q @ K^T without an explicit transpose (contract feature dims).
    s = jax.lax.dot_general(q_scratch[...], k.astype(compute_dtype),
                            contract_last,
                            preferred_element_type=jnp.float32)       # (TQ, TK)

    # Online softmax update.
    m_prev = m_scratch[...]
    m_new = jnp.maximum(m_prev, jnp.max(s, axis=-1, keepdims=True))
    alpha = jnp.exp(m_prev - m_new)
    p = jnp.exp(s - m_new)
    l_scratch[...] = alpha * l_scratch[...] + jnp.sum(p, axis=-1, keepdims=True)
    acc_scratch[...] = alpha * acc_scratch[...] + jnp.dot(
        p.astype(compute_dtype), v.astype(compute_dtype),
        preferred_element_type=jnp.float32)
    m_scratch[...] = m_new

    @pl.when(ki == pl.num_programs(2) - 1)
    def _finalize():
        inv_l = pl.reciprocal(l_scratch[...], approx=True)            # EUP slot
        o_ref[0] = (acc_scratch[...] * inv_l).astype(o_ref.dtype)


def _pick_tile(n, target):
    """Largest divisor of n that is <= target and a multiple of 8 (else n itself)."""
    if n <= target:
        return n
    for t in range(target, 0, -1):
        if n % t == 0 and t % 8 == 0:
            return t
    return n


def attention_head(x, w_qkv, b_qkv, *, compute_dtype=jnp.bfloat16,
                   q_tile=256, kv_tile=256):
    """x: (B, N, C) f32; w_qkv: (3C, C) PyTorch Linear layout; b_qkv: (3C,)."""
    B, N, C = x.shape
    scale_inv = 1.0 / math.sqrt(float(C))

    # Split the fused weight/bias into per-projection slabs (keeps every in-kernel
    # MXU operand lane-aligned; no weight transpose anywhere).
    wq, wk, wv = w_qkv[0:C], w_qkv[C:2 * C], w_qkv[2 * C:3 * C]       # (C, C) each
    bq = b_qkv[0:C].reshape(1, C).astype(jnp.float32)
    bk = b_qkv[C:2 * C].reshape(1, C).astype(jnp.float32)
    bv = b_qkv[2 * C:3 * C].reshape(1, C).astype(jnp.float32)

    tq = _pick_tile(N, q_tile)
    tk = _pick_tile(N, kv_tile)

    kernel = functools.partial(_fused_attention_kernel,
                               scale_inv=scale_inv, compute_dtype=compute_dtype)

    return pl.pallas_call(
        kernel,
        out_shape=jax.ShapeDtypeStruct((B, N, C), x.dtype),
        grid_spec=pltpu.PrefetchScalarGridSpec(
            num_scalar_prefetch=0,
            grid=(B, N // tq, N // tk),
            in_specs=[
                pl.BlockSpec((1, tq, C), lambda b, qi, ki: (b, qi, 0)),  # x (query rows)
                pl.BlockSpec((1, tk, C), lambda b, qi, ki: (b, 0, ki)),  # x (key/value rows)
                pl.BlockSpec((C, C), lambda b, qi, ki: (0, 0)),          # Wq
                pl.BlockSpec((C, C), lambda b, qi, ki: (0, 0)),          # Wk
                pl.BlockSpec((C, C), lambda b, qi, ki: (0, 0)),          # Wv
                pl.BlockSpec((1, C), lambda b, qi, ki: (0, 0)),          # bq
                pl.BlockSpec((1, C), lambda b, qi, ki: (0, 0)),          # bk
                pl.BlockSpec((1, C), lambda b, qi, ki: (0, 0)),          # bv
            ],
            out_specs=pl.BlockSpec((1, tq, C), lambda b, qi, ki: (b, qi, 0)),
            scratch_shapes=[
                pltpu.VMEM((tq, C), compute_dtype),   # cached Q tile
                pltpu.VMEM((tq, 1), jnp.float32),     # running max m
                pltpu.VMEM((tq, 1), jnp.float32),     # running sum l
                pltpu.VMEM((tq, C), jnp.float32),     # output accumulator
            ]),
        compiler_params=pltpu.CompilerParams(
            dimension_semantics=("parallel", "parallel", "arbitrary")),
    )(x, x, wq, wk, wv, bq, bk, bv)


def attention_head_ref(x, w_qkv, b_qkv):
    """Plain-JAX reference matching the PyTorch forward."""
    B, N, C = x.shape
    qkv = jnp.einsum("bnc,oc->bno", x, w_qkv) + b_qkv              # (B, N, 3C)
    qkv = qkv.reshape(B, N, 3, C).transpose(2, 0, 1, 3)            # (3, B, N, C)
    q, k, v = qkv[0], qkv[1], qkv[2]
    s = jnp.einsum("bnc,bmc->bnm", q, k) / math.sqrt(float(C))
    p = jax.nn.softmax(s, axis=-1)
    return jnp.einsum("bnm,bmc->bnc", p, v)


if __name__ == "__main__":
    B, N, d_model = 2, 8, 32

    key = jax.random.PRNGKey(0)
    kx, kw, kb = jax.random.split(key, 3)

    x = jax.random.normal(kx, (B, N, d_model), dtype=jnp.float32)

    # Deterministic PyTorch-Linear-style init: U(-1/sqrt(C), 1/sqrt(C)).
    bound = 1.0 / math.sqrt(d_model)
    w_qkv = jax.random.uniform(kw, (3 * d_model, d_model),
                               minval=-bound, maxval=bound, dtype=jnp.float32)
    b_qkv = jax.random.uniform(kb, (3 * d_model,),
                               minval=-bound, maxval=bound, dtype=jnp.float32)

    ref = attention_head_ref(x, w_qkv, b_qkv)

    # f32 path: validates the tiled / online-softmax algorithm at tight tolerance.
    out_f32 = jax.block_until_ready(
        attention_head(x, w_qkv, b_qkv, compute_dtype=jnp.float32))
    assert out_f32.shape == (B, N, d_model)
    assert jnp.allclose(out_f32, ref, atol=2e-3, rtol=2e-3), "f32 kernel mismatch"

    # bf16 MXU path (default): f32 accumulation, tolerance loosened for bf16 rounding.
    out_bf16 = jax.block_until_ready(attention_head(x, w_qkv, b_qkv))
    assert out_bf16.shape == (B, N, d_model)
    assert jnp.allclose(out_bf16, ref, atol=6e-2, rtol=6e-2), "bf16 kernel mismatch"

    print("KERNEL_OK")
</pallas_src>

<mosaic_0001>
module attributes {stable_mosaic.version = 11 : i64} {
  func.func @_fused_attention_kernel(%arg0: i32, %arg1: i32, %arg2: i32, %arg3: memref<1x8x32xf32, #tpu.memory_space<vmem>>, %arg4: memref<1x8x32xf32, #tpu.memory_space<vmem>>, %arg5: memref<32x32xf32, #tpu.memory_space<vmem>>, %arg6: memref<32x32xf32, #tpu.memory_space<vmem>>, %arg7: memref<32x32xf32, #tpu.memory_space<vmem>>, %arg8: memref<1x32xf32, #tpu.memory_space<vmem>>, %arg9: memref<1x32xf32, #tpu.memory_space<vmem>>, %arg10: memref<1x32xf32, #tpu.memory_space<vmem>>, %arg11: memref<1x8x32xf32, #tpu.memory_space<vmem>>, %arg12: memref<8x32xf32, #tpu.memory_space<vmem>>, %arg13: memref<8x1xf32, #tpu.memory_space<vmem>>, %arg14: memref<8x1xf32, #tpu.memory_space<vmem>>, %arg15: memref<8x32xf32, #tpu.memory_space<vmem>>) attributes {dimension_semantics = [#tpu.dimension_semantics<parallel>, #tpu.dimension_semantics<parallel>, #tpu.dimension_semantics<arbitrary>], iteration_bounds = array<i64: 2, 1, 1>, scalar_prefetch = 0 : i64, scratch_operands = 4 : i64, tpu.core_type = #tpu.core_type<tc>, window_params = [{transform_indices = @transform_0, window_bounds = array<i64: 1, 8, 32>}, {transform_indices = @transform_1, window_bounds = array<i64: 1, 8, 32>}, {pipeline_mode = #tpu.pipeline_mode<synchronous>, transform_indices = @transform_2, window_bounds = array<i64: 32, 32>}, {pipeline_mode = #tpu.pipeline_mode<synchronous>, transform_indices = @transform_3, window_bounds = array<i64: 32, 32>}, {pipeline_mode = #tpu.pipeline_mode<synchronous>, transform_indices = @transform_4, window_bounds = array<i64: 32, 32>}, {pipeline_mode = #tpu.pipeline_mode<synchronous>, transform_indices = @transform_5, window_bounds = array<i64: 1, 32>}, {pipeline_mode = #tpu.pipeline_mode<synchronous>, transform_indices = @transform_6, window_bounds = array<i64: 1, 32>}, {pipeline_mode = #tpu.pipeline_mode<synchronous>, transform_indices = @transform_7, window_bounds = array<i64: 1, 32>}, {transform_indices = @transform_8, window_bounds = array<i64: 1, 8, 32>}]} {
    %c0_i32 = arith.constant 0 : i32
    %0 = arith.cmpi eq, %arg2, %c0_i32 : i32
    %1 = arith.extui %0 : i1 to i32
    %c0_i32_0 = arith.constant 0 : i32
    %2 = arith.cmpi ne, %1, %c0_i32_0 : i32
    scf.if %2 {
      %c0_32 = arith.constant 0 : index
      %c0_33 = arith.constant 0 : index
      %c0_34 = arith.constant 0 : index
      %42 = vector.load %arg3[%c0_32, %c0_33, %c0_34] : memref<1x8x32xf32, #tpu.memory_space<vmem>>, vector<1x8x32xf32>
      %43 = vector.shape_cast %42 : vector<1x8x32xf32> to vector<8x32xf32>
      %c0_35 = arith.constant 0 : index
      %c0_36 = arith.constant 0 : index
      %44 = vector.load %arg5[%c0_35, %c0_36] : memref<32x32xf32, #tpu.memory_space<vmem>>, vector<32x32xf32>
      %cst_37 = arith.constant dense<0.000000e+00> : vector<8x32xf32>
      %45 = tpu.matmul %43, %44, %cst_37 {dimension_numbers = #tpu.dot_dimension_numbers<[1], [1], [0], [0], [0, 0, 1, 0], [], []>} : vector<8x32xf32>, vector<32x32xf32>, vector<8x32xf32> -> vector<8x32xf32>
      %c0_38 = arith.constant 0 : index
      %c0_39 = arith.constant 0 : index
      %46 = vector.load %arg8[%c0_38, %c0_39] : memref<1x32xf32, #tpu.memory_space<vmem>>, vector<1x32xf32>
      %47 = vector.broadcast %46 : vector<1x32xf32> to vector<8x32xf32>
      %48 = arith.addf %45, %47 : vector<8x32xf32>
      %cst_40 = arith.constant 0.176776692 : f32
      %49 = vector.broadcast %cst_40 : f32 to vector<8x32xf32>
      %50 = arith.mulf %48, %49 : vector<8x32xf32>
      %c0_41 = arith.constant 0 : index
      %c0_42 = arith.constant 0 : index
      %51 = vector.load %arg12[%c0_41, %c0_42] : memref<8x32xf32, #tpu.memory_space<vmem>>, vector<8x32xf32>
      tpu.vector_store %arg12[%c0_41, %c0_42], %50 {strides = array<i32>} : memref<8x32xf32, #tpu.memory_space<vmem>>, vector<8x32xf32>,
      %cst_43 = arith.constant 0xFF800000 : f32
      %52 = vector.broadcast %cst_43 : f32 to vector<8x1xf32>
      %c0_44 = arith.constant 0 : index
      %c0_45 = arith.constant 0 : index
      %53 = vector.load %arg13[%c0_44, %c0_45] : memref<8x1xf32, #tpu.memory_space<vmem>>, vector<8x1xf32>
      tpu.vector_store %arg13[%c0_44, %c0_45], %52 {strides = array<i32>} : memref<8x1xf32, #tpu.memory_space<vmem>>, vector<8x1xf32>,
      %cst_46 = arith.constant 0.000000e+00 : f32
      %54 = vector.broadcast %cst_46 : f32 to vector<8x1xf32>
      %c0_47 = arith.constant 0 : index
      %c0_48 = arith.constant 0 : index
      %55 = vector.load %arg14[%c0_47, %c0_48] : memref<8x1xf32, #tpu.memory_space<vmem>>, vector<8x1xf32>
      tpu.vector_store %arg14[%c0_47, %c0_48], %54 {strides = array<i32>} : memref<8x1xf32, #tpu.memory_space<vmem>>, vector<8x1xf32>,
      %cst_49 = arith.constant 0.000000e+00 : f32
      %56 = vector.broadcast %cst_49 : f32 to vector<8x32xf32>
      %c0_50 = arith.constant 0 : index
      %c0_51 = arith.constant 0 : index
      %57 = vector.load %arg15[%c0_50, %c0_51] : memref<8x32xf32, #tpu.memory_space<vmem>>, vector<8x32xf32>
      tpu.vector_store %arg15[%c0_50, %c0_51], %56 {strides = array<i32>} : memref<8x32xf32, #tpu.memory_space<vmem>>, vector<8x32xf32>,
    } else {
    }
    %c0 = arith.constant 0 : index
    %c0_1 = arith.constant 0 : index
    %c0_2 = arith.constant 0 : index
    %3 = vector.load %arg4[%c0, %c0_1, %c0_2] : memref<1x8x32xf32, #tpu.memory_space<vmem>>, vector<1x8x32xf32>
    %4 = vector.shape_cast %3 : vector<1x8x32xf32> to vector<8x32xf32>
    %c0_3 = arith.constant 0 : index
    %c0_4 = arith.constant 0 : index
    %5 = vector.load %arg6[%c0_3, %c0_4] : memref<32x32xf32, #tpu.memory_space<vmem>>, vector<32x32xf32>
    %cst = arith.constant dense<0.000000e+00> : vector<8x32xf32>
    %6 = tpu.matmul %4, %5, %cst {dimension_numbers = #tpu.dot_dimension_numbers<[1], [1], [0], [0], [0, 0, 1, 0], [], []>} : vector<8x32xf32>, vector<32x32xf32>, vector<8x32xf32> -> vector<8x32xf32>
    %c0_5 = arith.constant 0 : index
    %c0_6 = arith.constant 0 : index
    %7 = vector.load %arg9[%c0_5, %c0_6] : memref<1x32xf32, #tpu.memory_space<vmem>>, vector<1x32xf32>
    %8 = vector.broadcast %7 : vector<1x32xf32> to vector<8x32xf32>
    %9 = arith.addf %6, %8 : vector<8x32xf32>
    %c0_7 = arith.constant 0 : index
    %c0_8 = arith.constant 0 : index
    %10 = vector.load %arg7[%c0_7, %c0_8] : memref<32x32xf32, #tpu.memory_space<vmem>>, vector<32x32xf32>
    %cst_9 = arith.constant dense<0.000000e+00> : vector<8x32xf32>
    %11 = tpu.matmul %4, %10, %cst_9 {dimension_numbers = #tpu.dot_dimension_numbers<[1], [1], [0], [0], [0, 0, 1, 0], [], []>} : vector<8x32xf32>, vector<32x32xf32>, vector<8x32xf32> -> vector<8x32xf32>
    %c0_10 = arith.constant 0 : index
    %c0_11 = arith.constant 0 : index
    %12 = vector.load %arg10[%c0_10, %c0_11] : memref<1x32xf32, #tpu.memory_space<vmem>>, vector<1x32xf32>
    %13 = vector.broadcast %12 : vector<1x32xf32> to vector<8x32xf32>
    %14 = arith.addf %11, %13 : vector<8x32xf32>
    %c0_12 = arith.constant 0 : index
    %c0_13 = arith.constant 0 : index
    %15 = vector.load %arg12[%c0_12, %c0_13] : memref<8x32xf32, #tpu.memory_space<vmem>>, vector<8x32xf32>
    %cst_14 = arith.constant dense<0.000000e+00> : vector<8x8xf32>
    %16 = tpu.matmul %15, %9, %cst_14 {dimension_numbers = #tpu.dot_dimension_numbers<[1], [1], [0], [0], [0, 0, 1, 0], [], []>} : vector<8x32xf32>, vector<8x32xf32>, vector<8x8xf32> -> vector<8x8xf32>
    %c0_15 = arith.constant 0 : index
    %c0_16 = arith.constant 0 : index
    %17 = vector.load %arg13[%c0_15, %c0_16] : memref<8x1xf32, #tpu.memory_space<vmem>>, vector<8x1xf32>
    %cst_17 = arith.constant dense<0xFF800000> : vector<8xf32>
    %18 = vector.multi_reduction <maximumf>, %16, %cst_17 [1] : vector<8x8xf32> to vector<8xf32>
    %19 = vector.shape_cast %18 : vector<8xf32> to vector<8x1xf32>
    %20 = arith.maximumf %17, %19 : vector<8x1xf32>
    %21 = arith.subf %17, %20 : vector<8x1xf32>
    %22 = math.exp %21 : vector<8x1xf32>
    %23 = vector.broadcast %20 : vector<8x1xf32> to vector<8x8xf32>
    %24 = arith.subf %16, %23 : vector<8x8xf32>
    %25 = math.exp %24 : vector<8x8xf32>
    %c0_18 = arith.constant 0 : index
    %c0_19 = arith.constant 0 : index
    %26 = vector.load %arg14[%c0_18, %c0_19] : memref<8x1xf32, #tpu.memory_space<vmem>>, vector<8x1xf32>
    %27 = arith.mulf %22, %26 : vector<8x1xf32>
    %cst_20 = arith.constant dense<0.000000e+00> : vector<8xf32>
    %28 = vector.multi_reduction <add>, %25, %cst_20 [1] : vector<8x8xf32> to vector<8xf32>
    %29 = vector.shape_cast %28 : vector<8xf32> to vector<8x1xf32>
    %30 = arith.addf %27, %29 : vector<8x1xf32>
    %c0_21 = arith.constant 0 : index
    %c0_22 = arith.constant 0 : index
    %31 = vector.load %arg14[%c0_21, %c0_22] : memref<8x1xf32, #tpu.memory_space<vmem>>, vector<8x1xf32>
    tpu.vector_store %arg14[%c0_21, %c0_22], %30 {strides = array<i32>} : memref<8x1xf32, #tpu.memory_space<vmem>>, vector<8x1xf32>,
    %c0_23 = arith.constant 0 : index
    %c0_24 = arith.constant 0 : index
    %32 = vector.load %arg15[%c0_23, %c0_24] : memref<8x32xf32, #tpu.memory_space<vmem>>, vector<8x32xf32>
    %33 = vector.broadcast %22 : vector<8x1xf32> to vector<8x32xf32>
    %34 = arith.mulf %33, %32 : vector<8x32xf32>
    %cst_25 = arith.constant dense<0.000000e+00> : vector<8x32xf32>
    %35 = tpu.matmul %25, %14, %cst_25 {dimension_numbers = #tpu.dot_dimension_numbers<[1], [0], [0], [1], [0, 0, 1, 1], [], []>} : vector<8x8xf32>, vector<8x32xf32>, vector<8x32xf32> -> vector<8x32xf32>
    %36 = arith.addf %34, %35 : vector<8x32xf32>
    %c0_26 = arith.constant 0 : index
    %c0_27 = arith.constant 0 : index
    %37 = vector.load %arg15[%c0_26, %c0_27] : memref<8x32xf32, #tpu.memory_space<vmem>>, vector<8x32xf32>
    tpu.vector_store %arg15[%c0_26, %c0_27], %36 {strides = array<i32>} : memref<8x32xf32, #tpu.memory_space<vmem>>, vector<8x32xf32>,
    %c0_28 = arith.constant 0 : index
    %c0_29 = arith.constant 0 : index
    %38 = vector.load %arg13[%c0_28, %c0_29] : memref<8x1xf32, #tpu.memory_space<vmem>>, vector<8x1xf32>
    tpu.vector_store %arg13[%c0_28, %c0_29], %20 {strides = array<i32>} : memref<8x1xf32, #tpu.memory_space<vmem>>, vector<8x1xf32>,
    %c0_i32_30 = arith.constant 0 : i32
    %39 = arith.cmpi eq, %arg2, %c0_i32_30 : i32
    %40 = arith.extui %39 : i1 to i32
    %c0_i32_31 = arith.constant 0 : i32
    %41 = arith.cmpi ne, %40, %c0_i32_31 : i32
    scf.if %41 {
      %c0_32 = arith.constant 0 : index
      %c0_33 = arith.constant 0 : index
      %42 = vector.load %arg14[%c0_32, %c0_33] : memref<8x1xf32, #tpu.memory_space<vmem>>, vector<8x1xf32>
      %43 = tpu.reciprocal %42 {approx = true} : vector<8x1xf32> -> vector<8x1xf32>
      %c0_34 = arith.constant 0 : index
      %c0_35 = arith.constant 0 : index
      %44 = vector.load %arg15[%c0_34, %c0_35] : memref<8x32xf32, #tpu.memory_space<vmem>>, vector<8x32xf32>
      %45 = vector.broadcast %43 : vector<8x1xf32> to vector<8x32xf32>
      %46 = arith.mulf %44, %45 : vector<8x32xf32>
      %c0_36 = arith.constant 0 : index
      %c0_37 = arith.constant 0 : index
      %c0_38 = arith.constant 0 : index
      %47 = vector.load %arg11[%c0_36, %c0_37, %c0_38] : memref<1x8x32xf32, #tpu.memory_space<vmem>>, vector<1x8x32xf32>
      %48 = vector.shape_cast %47 : vector<1x8x32xf32> to vector<8x32xf32>
      %49 = vector.shape_cast %46 : vector<8x32xf32> to vector<1x8x32xf32>
      tpu.vector_store %arg11[%c0_36, %c0_37, %c0_38], %49 {strides = array<i32>} : memref<1x8x32xf32, #tpu.memory_space<vmem>>, vector<1x8x32xf32>,
    } else {
    }
    return
  }
  func.func @transform_0(%arg0: i32, %arg1: i32, %arg2: i32) -> (i32, i32, i32) {
    %c0_i32 = arith.constant 0 : i32
    %c0_i32_0 = arith.constant 0 : i32
    return %arg0, %arg1, %c0_i32 : i32, i32, i32
  }
  func.func @transform_1(%arg0: i32, %arg1: i32, %arg2: i32) -> (i32, i32, i32) {
    %c0_i32 = arith.constant 0 : i32
    %c0_i32_0 = arith.constant 0 : i32
    return %arg0, %c0_i32, %arg2 : i32, i32, i32
  }
  func.func @transform_2(%arg0: i32, %arg1: i32, %arg2: i32) -> (i32, i32) {
    %c0_i32 = arith.constant 0 : i32
    %c0_i32_0 = arith.constant 0 : i32
    %c0_i32_1 = arith.constant 0 : i32
    return %c0_i32, %c0_i32_0 : i32, i32
  }
  func.func @transform_3(%arg0: i32, %arg1: i32, %arg2: i32) -> (i32, i32) {
    %c0_i32 = arith.constant 0 : i32
    %c0_i32_0 = arith.constant 0 : i32
    %c0_i32_1 = arith.constant 0 : i32
    return %c0_i32, %c0_i32_0 : i32, i32
  }
  func.func @transform_4(%arg0: i32, %arg1: i32, %arg2: i32) -> (i32, i32) {
    %c0_i32 = arith.constant 0 : i32
    %c0_i32_0 = arith.constant 0 : i32
    %c0_i32_1 = arith.constant 0 : i32
    return %c0_i32, %c0_i32_0 : i32, i32
  }
  func.func @transform_5(%arg0: i32, %arg1: i32, %arg2: i32) -> (i32, i32) {
    %c0_i32 = arith.constant 0 : i32
    %c0_i32_0 = arith.constant 0 : i32
    %c0_i32_1 = arith.constant 0 : i32
    return %c0_i32, %c0_i32_0 : i32, i32
  }
  func.func @transform_6(%arg0: i32, %arg1: i32, %arg2: i32) -> (i32, i32) {
    %c0_i32 = arith.constant 0 : i32
    %c0_i32_0 = arith.constant 0 : i32
    %c0_i32_1 = arith.constant 0 : i32
    return %c0_i32, %c0_i32_0 : i32, i32
  }
  func.func @transform_7(%arg0: i32, %arg1: i32, %arg2: i32) -> (i32, i32) {
    %c0_i32 = arith.constant 0 : i32
    %c0_i32_0 = arith.constant 0 : i32
    %c0_i32_1 = arith.constant 0 : i32
    return %c0_i32, %c0_i32_0 : i32, i32
  }
  func.func @transform_8(%arg0: i32, %arg1: i32, %arg2: i32) -> (i32, i32, i32) {
    %c0_i32 = arith.constant 0 : i32
    %c0_i32_0 = arith.constant 0 : i32
    return %arg0, %arg1, %c0_i32 : i32, i32, i32
  }
}

</mosaic_0001>

<bundles_post_ra>
// kernel: tpu_custom_call.1
= control target key start
LH: loop header
LB: loop body
LE: loop exit
PB: predicated region body
PF: predicated region fallthrough
CT: control target
= control target key end

     0   :  { %s1851_s0 = inlined_call_operand.hbm [shape: f32[2,8,32], index: 0, kind: input, shape index: {}]   ;;  %s1852_s1 = inlined_call_operand.hbm [shape: f32[2,8,32], index: 1, kind: input, shape index: {}]   ;;  %s1853_s2 = inlined_call_operand.hbm [shape: f32[32,32], index: 2, kind: input, shape index: {}]   ;;  %s1854_s3 = inlined_call_operand.hbm [shape: f32[32,32], index: 3, kind: input, shape index: {}]   ;;  %s1855_s4 = inlined_call_operand.hbm [shape: f32[32,32], index: 4, kind: input, shape index: {}]   ;;  %s1856_s5 = inlined_call_operand.vmem [shape: f32[1,32], index: 5, kind: input, shape index: {}]   ;;  %s1857_s6 = inlined_call_operand.vmem [shape: f32[1,32], index: 6, kind: input, shape index: {}]   ;;  %s1858_s7 = inlined_call_operand.vmem [shape: f32[1,32], index: 7, kind: input, shape index: {}]   ;;  %s1859_s8 = inlined_call_operand.hbm [shape: f32[2,8,32], index: 8, kind: output, shape index: {}]  }
   0x1   :  { %1864 = sst [smem:[#allocation23_spill]] %s1851_s0 }
   0x2   :  { %1865 = sst [smem:[#allocation24_spill]] %s1853_s2 }
   0x3   :  { %1866 = sst [smem:[#allocation25_spill]] %s1854_s3 }
   0x4   :  { %1867 = sst [smem:[#allocation26_spill]] %s1855_s4 }
   0x5   :  { %13 = vsyncpa [#allocation7], 0 }
   0x6   :  { %15 = vsyncpa [#allocation7 + $0x1], 0 }
   0x7   :  { %16 = vsyncpa [#allocation10], 0 }
   0x8   :  { %18 = vsyncpa [#allocation10 + $0x1], 0 }
   0x9   :  { %19 = vsyncpa [#allocation13], 0 }
   0xa   :  { %20 = vsyncpa [#allocation8], 0 }
   0xb   :  { %22 = vsyncpa [#allocation8 + $0x1], 0  ;;  %s1577_s27 = smov 0   ;;  %s1579_s28 = smov 0  }
   0xc   :  { %s1581_s29 = smov 0   ;;  %s1583_s30 = smov 0  }
   0xd   :  { %s1585_s9 = smov 0   ;;  %s1587_s10 = smov 0  }
   0xe LB: > { %s1608_s11 = sadd.s32 4294967295, %s1518_s10   ;;  %s1076_s12 = sadd.s32 4294967294, %s1518_s10   ;;  %s1518_s10 = sphi %s1587_s10, %s28_s10   ;;  %s1514_s9 = sphi %s1585_s9, %s1894_s9   ;;  %s1510_s30 = sphi %s1583_s30, %s1893_s30   ;;  %s1506_s29 = sphi %s1581_s29, %s1892_s29   ;;  %s1502_s28 = sphi %s1579_s28, %s1891_s28   ;;  %s1498_s27 = sphi %s1577_s27, %s1890_s27  }
   0xf   : > { %p69_p0 = scmp.ne.s32.totalorder %s1502_s28, %s1498_s27  ;;  %p1860_p1 = scmp.eq.s32.totalorder %s1608_s11, 0 }
  0x10   : > { %p255_p3 = scmp.eq.s32.totalorder %s1076_s12, 1  ;;  %p1077_p5 = scmp.ge.s32.totalorder %s1518_s10, 1 }
  0x11   : > { %p1617_p4 = por %p1860_p1, %p69_p0  ;;  %p262_p7 = scmp.lt.s32.totalorder %s1518_s10, 3 }
  0x12   : > { %p1622_p6 = por %p255_p3, %p69_p0  ;;  %s1520_s16 = smov [#allocation11]  }
  0x13   : > { %s1868_s13 = scalar_select %p1617_p4, 1, 0 }
  0x14   : > { %s1869_s14 = scalar_select %p1622_p6, 1, 0 }
  0x15   : > { %p1627_p8 = pnand %p1077_p5, %p262_p7  ;;  %s274_s17 = sshll.u32 %s1520_s16, 4  ;;  %s275_s17 = int_to_ptr.vmem [resolvable:$true] %s274_s17 }
  0x16   : > { %1870 = sst [smem:[#allocation21_spill]] %s1869_s14  ;;  %s1521_s19 = smov [#allocation12]  }
  0x17   : > { %p1198_p9 = pneg %p1627_p8  ;;  %s287_s20 = sshll.u32 %s1521_s19, 4  ;;  %s288_s20 = int_to_ptr.vmem [resolvable:$true] %s287_s20 }
  0x18   : > { %s1522_s21 = smov [#allocation14]   ;;  %s1303_s23 = scalar_lea.vmem %s275_s17, 512 }
  0x19   : > { %p1636_p11 = pnand %p1198_p9, %p1860_p1  ;;  %s300_s22 = sshll.u32 %s1522_s21, 4  ;;  %s301_s22 = int_to_ptr.vmem [resolvable:$true] %s300_s22 }
  0x1a   : > { %p1304_p13 = scmp.ne.s32.totalorder %s275_s17, %s1303_s23  ;;  %p1311_p5 = scmp.lt.s32.totalorder %s275_s17, %s275_s17 }
  0x1b   : > { %p1294_p12 = pneg %p1636_p11  ;;  %p1312_p7 = scmp.lt.s32.totalorder %s1303_s23, %s1303_s23 }
  0x1d   : > { %p1306_p0 = pnand %p1304_p13, %p1294_p12  ;;  %p1313_p9 = por %p1312_p7, %p1311_p5 }
  0x1f   : > { %p1307_p3 = pneg %p1306_p0 }
  0x21   : > { %p1314_p10 = pnand %p1313_p9, %p1307_p3 }
  0x23   : > { %1317 = shalt.err (!%p1314_p10)
}
  0x24   : > { %s1523_s24 = smov 128   ;;  %s1524_s25 = smov 8  }
  0x25   : > { %s1873_s2 = sld [smem:[#allocation24_spill]]  ;;  %s1329_s16 = scalar_lea.vmem %s288_s20, 512 }
  0x26   : > { %p1330_p1 = scmp.ne.s32.totalorder %s288_s20, %s1329_s16  ;;  %p1337_p2 = scmp.lt.s32.totalorder %s288_s20, %s288_s20 }
  0x27   : > { %p1338_p6 = scmp.lt.s32.totalorder %s1329_s16, %s1329_s16 }
  0x28   : > { %p1332_p13 = pnand %p1330_p1, %p1294_p12 }
  0x29   : > { %p1339_p5 = por %p1338_p6, %p1337_p2 }
  0x2a   : > { %p1333_p0 = pneg %p1332_p13 }
  0x2b   : > { %1201 = dma.hbm_to_vmem [thread:$0]  (!%p1636_p11), %s1873_s2, 512, %s275_s17, [#allocation10], %s1523_s24, %s1523_s24, %s1524_s25  }
  0x2c   : > { %p1340_p3 = pnand %p1339_p5, %p1333_p0 }
  0x2e   : > { %1343 = shalt.err (!%p1340_p3)
}
  0x2f   : > { %s1874_s3 = sld [smem:[#allocation25_spill]]  ;;  %s1355_s17 = scalar_lea.vmem %s301_s22, 512 }
  0x30   : > { %p1356_p10 = scmp.ne.s32.totalorder %s301_s22, %s1355_s17  ;;  %p1363_p9 = scmp.lt.s32.totalorder %s301_s22, %s301_s22 }
  0x31   : > { %p1364_p13 = scmp.lt.s32.totalorder %s1355_s17, %s1355_s17 }
  0x32   : > { %p1358_p7 = pnand %p1356_p10, %p1294_p12 }
  0x33   : > { %p1365_p4 = por %p1364_p13, %p1363_p9 }
  0x34   : > { %p1359_p1 = pneg %p1358_p7 }
  0x35   : > { %1204 = dma.hbm_to_vmem [thread:$0]  (!%p1636_p11), %s1874_s3, 512, %s288_s20, [#allocation13], %s1523_s24, %s1523_s24, %s1524_s25  }
  0x36   : > { %p1366_p2 = pnand %p1365_p4, %p1359_p1 }
  0x38   : > { %1369 = shalt.err (!%p1366_p2)
}
  0x39   : > { %s1875_s4 = sld [smem:[#allocation26_spill]]  ;;  %s56_s20 = sadd.s32 1, %s1506_s29 }
  0x3a   : > { %s47_s12 = sadd.s32 1, %s1514_s9  ;;  %p63_p4 = scmp.ne.s32.totalorder %s1506_s29, %s1502_s28 }
  0x3b   : > { %p49_p6 = scmp.ge.s32.totalorder %s47_s12, 2  ;;  %p64_p12 = scmp.eq.s32.totalorder %s1518_s10, 0 }
  0x3c   : > { %p1876_p0 = scmp.eq.s32.totalorder %s1608_s11, 1  ;;  %p1222_p3 = scmp.lt.s32.totalorder %s1518_s10, 2 }
  0x3d   : > { %s1896_s12 = smov (%p49_p6, %s47_s12), 0  ;;  %p65_p10 = por %p64_p12, %p63_p4 }
  0x3e   : > { %p1673_p5 = por %p1876_p0, %p63_p4  ;;  %1878 = sst [smem:[#allocation22_spill]] %s1896_s12 }
  0x3f   : > { %1207 = dma.hbm_to_vmem [thread:$0]  (!%p1636_p11), %s1875_s4, 512, %s301_s22, [#allocation13], %s1523_s24, %s1523_s24, %s1524_s25  }
  0x40   : > { %s323_s16 = sand.u32 1, %s1506_s29   ;;  %s51_s19 = ssub.s32 %s1514_s9, %s1896_s12 }
  0x41   : > { %p54_p11 = scmp.eq.s32.totalorder %s51_s19, 0  ;;  %s1082_s22 = sshll.u32 %s323_s16, 3 }
  0x42   : > { %s1083_s24 = sshll.u32 %s1514_s9, 7  ;;  %s1879_s0 = sld [smem:[#allocation23_spill]] }
  0x43   : > { %s1685_s25 = scalar_select %p54_p11, %s1506_s29, %s56_s20  }
  0x44   : > { %s327_s26 = scalar_lea.vmem [#allocation6], %s1082_s22  ;;  %p1692_p7 = pnand %p1222_p3, %p65_p10 }
  0x45   : > { %s335_s2 = sshll.u32 %s327_s26, 4  ;;  %s1699_s19 = scalar_lea.hbm %s1852_s1, %s1083_s24  ;;  %s336_s2 = int_to_ptr.vmem [resolvable:$true] %s335_s2 }
  0x46   : > { %s342_s20 = sand.u32 1, %s1518_s10   ;;  %s324_s12 = scalar_lea.sflag [#allocation7], %s323_s16 }
  0x47   : > { %p1372_p1 = pneg %p1692_p7  ;;  %s1383_s21 = scalar_lea.vmem %s336_s2, 128 }
  0x48   : > { %s333_s23 = scalar_lea.hbm %s1879_s0, %s1083_s24  ;;  %p1384_p9 = scmp.ne.s32.totalorder %s336_s2, %s1383_s21 }
  0x49   : > { %s1525_s17 = smov [#allocation6]  }
  0x4a   : > { %p1386_p13 = pnand %p1384_p9, %p1372_p1  ;;  %s1388_s26 = sshll.u32 %s1525_s17, 4  ;;  %s1389_s26 = int_to_ptr.vmem [resolvable:$false] %s1388_s26 }
  0x4b   : > { %s1390_s0 = scalar_lea.vmem %s1389_s26, 256  ;;  %p1391_p4 = scmp.lt.s32.totalorder %s336_s2, %s1389_s26 }
  0x4c   : > { %p1387_p2 = pneg %p1386_p13  ;;  %p1392_p6 = scmp.lt.s32.totalorder %s1390_s0, %s1383_s21 }
  0x4e   : > { %p1393_p12 = por %p1392_p6, %p1391_p4 }
  0x50   : > { %p1394_p0 = pnand %p1393_p12, %p1387_p2 }
  0x52   : > { %1397 = shalt.err (!%p1394_p0)
}
  0x53   : > { %1211 = dma.hbm_to_vmem [thread:$0]  (!%p1692_p7), %s333_s23, 128, %s336_s2, %s324_s12  }
  0x54   : > { %s346_s4 = scalar_lea.vmem [#allocation9], %s1082_s22  ;;  %s343_s16 = scalar_lea.sflag [#allocation10], %s342_s20 }
  0x55   : > { %s354_s14 = sshll.u32 %s346_s4, 4  ;;  %s1526_s17 = smov [#allocation9]   ;;  %s355_s14 = int_to_ptr.vmem [resolvable:$true] %s354_s14 }
  0x56   : > { %s1411_s24 = scalar_lea.vmem %s355_s14, 128  ;;  %s1416_s26 = sshll.u32 %s1526_s17, 4  ;;  %s1417_s26 = int_to_ptr.vmem [resolvable:$false] %s1416_s26 }
  0x57   : > { %p1412_p3 = scmp.ne.s32.totalorder %s355_s14, %s1411_s24  ;;  %s1418_s0 = scalar_lea.vmem %s1417_s26, 256 }
  0x58   : > { %p1419_p9 = scmp.lt.s32.totalorder %s355_s14, %s1417_s26  ;;  %p1420_p13 = scmp.lt.s32.totalorder %s1418_s0, %s1411_s24 }
  0x59   : > { %p1414_p10 = pnand %p1412_p3, %p1372_p1 }
  0x5a   : > { %p1421_p2 = por %p1420_p13, %p1419_p9 }
  0x5b   : > { %p1415_p11 = pneg %p1414_p10 }
  0x5d   : > { %p1422_p4 = pnand %p1421_p2, %p1415_p11 }
  0x5f   : > { %1425 = shalt.err (!%p1422_p4)
}
  0x60   : > { %1214 = dma.hbm_to_vmem [thread:$0]  (!%p1692_p7), %s1699_s19, 128, %s355_s14, %s343_s16  }
  0x61   : > { %363 = sbr.rel (%p1627_p8) target bundleno = 1114 (0x45a), region = 52  ;;  %s1718_s2 = sand.u32 (!%p1627_p8), 1, %s1502_s28  }
  0x62   : > { %s1721_s12 = sshll.u32 (!%p1627_p8), %s1718_s2, 3  ;;  %s366_s22 = scalar_lea.sflag (!%p1627_p8), [#allocation7], %s1718_s2 }
  0x63   : > { %s369_s23 = scalar_lea.vmem (!%p1627_p8), [#allocation6], %s1721_s12  ;;  %p1881_p1 = scmp.ne.s32.totalorder (!%p1627_p8), %s1868_s13, 0 }
  0x66   : > { %1477 = dma.done.wait (%p1881_p1), %s366_s22, 128  }
  0x67   : > { %1479 = vsyncadd (%p1881_p1), %s366_s22, 4294967168  ;;  %s374_s3 = sand.u32 1, %s1608_s11   ;;  %s378_s19 = scalar_lea.vmem [#allocation9], %s1721_s12 }
  0x68   : > { %s375_s15 = scalar_lea.sflag [#allocation10], %s374_s3 }
  0x69   : > { %1481 = dma.done.wait (%p1881_p1), %s375_s15, 128  }
  0x6a   : > { %1483 = vsyncadd (%p1881_p1), %s375_s15, 4294967168  ;;  %p1882_p8 = scmp.eq.s32.totalorder %s1608_s11, 0 }
  0x6c   : > { %1485 = dma.done.wait (%p1882_p8), [#allocation10], 512   ;;  %p1883_p7 = pmov %p1882_p8 }
  0x6e   : > { %1487 = vsyncadd (%p1883_p7), [#allocation10], 4294966784  ;;  %p1884_p6 = pmov %p1883_p7 }
  0x70   : > { %1489 = dma.done.wait (%p1884_p6), [#allocation13], 1024   ;;  %p1885_p12 = pmov %p1884_p6 }
  0x71   : > { %vm444_vm0 = vcmask 261120   ;;  %v1527_v0 = vmov 0.0   ;;  %vm1528_vm1 = vmmov 0   ;;  %v436_v1 = vld [vmem:[#allocation11 + $0x18] sm:$0xff]  ;;  %v435_v3 = vld [vmem:[#allocation11 + $0x10] sm:$0xff]  ;;  %v434_v5 = vld [vmem:[#allocation11 + $0x8] sm:$0xff] }
  0x72   : > { %1491 = vsyncadd (%p1885_p12), [#allocation13], 4294966272  ;;  %1137 = vmatprep.subr.mxu0 %v1527_v0  ;;  %535 = vst.msk [vmem:[#allocation5] sm:$0xff] %vm444_vm0, %v1527_v0  ;;  %1148 = vmatprep.subr.mxu1 %v1527_v0  ;;  %v540_v2 = vld [vmem:[#allocation12 + $0x18] sm:$0xff]  ;;  %v539_v4 = vld [vmem:[#allocation12 + $0x10] sm:$0xff]  ;;  %vm532_vm2 = vcmask 7168  }
  0x73   : > { %1145 = vmatprep.mubr.msk.f32.mxu0 %vm1528_vm1, %v1527_v0  ;;  %1156 = vmatprep.mubr.msk.f32.mxu1 %vm1528_vm1, %v1527_v0  ;;  %v538_v6 = vld [vmem:[#allocation12 + $0x8] sm:$0xff]  ;;  %v433_v7 = vld [vmem:[#allocation11] sm:$0xff]  ;;  %v536_v10 = vld [vmem:[%s378_s19] sm:$0xff]  ;;  %v1529_v22 = vmov -inf   ;;  %534 = vst.msk [vmem:[#allocation4] sm:$0xff] %vm532_vm2, %v1527_v0  ;;  %vm805_vm3 = vcmask 64512  }
  0x74   : > { %1138 = vmatpush3.xpose.msk.msra.mxu0 %vm444_vm0, %v436_v1  ;;  %1149 = vmatpush3.xpose.msk.msra.mxu1 %vm444_vm0, %v540_v2  ;;  %v537_v8 = vld [vmem:[#allocation12] sm:$0xff]  ;;  %v637_v21 = vld [vmem:[#allocation14 + $0x18] sm:$0xff]  ;;  %533 = vst.msk [vmem:[#allocation3] sm:$0xff] %vm532_vm2, %v1529_v22  ;;  %v636_v23 = vld [vmem:[#allocation14 + $0x10] sm:$0xff]  ;;  %v1530_v29 = vmov 0   ;;  %s1115_s16 = sshll.u32 %s1510_s30, 7 }
  0x75   : > { %1139 = vmatprep.subr.mxu0 %v1527_v0  ;;  %1150 = vmatprep.subr.mxu1 %v1527_v0  ;;  %v432_v9 = vld [vmem:[%s369_s23] sm:$0xff]  ;;  %s427_s24 = scalar_lea.vmem [#allocation15], %s1721_s12  ;;  %s938_s22 = scalar_lea.hbm %s1859_s8, %s1115_s16 }
  0x76   : > { %v1093_v11 = vld [vmem:[%s1856_s5] ss:$0 sm:$0xff]  ;;  %v635_v24 = vld [vmem:[#allocation14 + $0x8] sm:$0xff]  ;;  %1284 = vset.pattern.permute.xlu0 %v1530_v29  ;;  %1285 = vset.pattern.permute.xlu1 %v1530_v29  ;;  %s940_s17 = sshll.u32 %s427_s24, 4  ;;  %s926_s23 = scalar_lea.sflag [#allocation8], %s1718_s2  ;;  %s941_s17 = int_to_ptr.vmem [resolvable:$true] %s940_s17 }
  0x77   : > { %v1099_v12 = vld [vmem:[%s1857_s6] ss:$0 sm:$0xff]  ;;  %s1426_s3 = scalar_lea.vmem %s941_s17, 128  ;;  %s1531_s15 = smov [#allocation15]  }
  0x78   : > { %1140 = vmatpush3.xpose.msk.msra.mxu0 %vm444_vm0, %v435_v3  ;;  %1151 = vmatpush3.xpose.msk.msra.mxu1 %vm444_vm0, %v539_v4  ;;  %v634_v25 = vld [vmem:[#allocation14] sm:$0xff]  ;;  %p1427_p0 = scmp.ne.s32.totalorder %s941_s17, %s1426_s3  ;;  %s1430_s30 = sshll.u32 %s1531_s15, 4  ;;  %s1431_s30 = int_to_ptr.vmem [resolvable:$false] %s1430_s30 }
  0x79   : > { %1141 = vmatprep.subr.mxu0 %v1527_v0  ;;  %1152 = vmatprep.subr.mxu1 %v1527_v0  ;;  %v1105_v34 = vld [vmem:[%s1858_s7] ss:$0 sm:$0xff]  ;;  %v829_v51 = vld [vmem:[#allocation5] sm:$0xff]  ;;  %s1432_s12 = scalar_lea.vmem %s1431_s30, 256  ;;  %p1433_p11 = scmp.lt.s32.totalorder %s941_s17, %s1431_s30 }
  0x7a   : > { %v821_v45 = vld [vmem:[#allocation4] sm:$0xff]  ;;  %p1428_p3 = pnand %p1427_p0, %p1673_p5  ;;  %p1434_p9 = scmp.lt.s32.totalorder %s1432_s12, %s1426_s3 }
  0x7b   : > { %v804_v30 = vld [vmem:[#allocation3] sm:$0xff] }
  0x7c   : > { %1142 = vmatpush3.xpose.msk.msra.mxu0 %vm444_vm0, %v434_v5  ;;  %1153 = vmatpush3.xpose.msk.msra.mxu1 %vm444_vm0, %v538_v6  ;;  %p1429_p10 = pneg %p1428_p3  ;;  %p1435_p13 = por %p1434_p9, %p1433_p11 }
  0x7d   : > { %1143 = vmatprep.subr.mxu0 %v1527_v0  ;;  %1154 = vmatprep.subr.mxu1 %v1527_v0 }
  0x7e   : > { %p1436_p2 = pnand %p1435_p13, %p1429_p10 }
  0x80   : > { %1144 = vmatpush3.xpose.msk.msra.mxu0 %vm444_vm0, %v433_v7  ;;  %1155 = vmatpush3.xpose.msk.msra.mxu1 %vm444_vm0, %v537_v8 }
  0x81   : > { %1170 = vmatprep.subr.mxu1 %v1527_v0  ;;  %1159 = vmatprep.subr.mxu0 %v1527_v0 }
  0x83   : > { %1146 = vmatmul.mubr.msk.f32.vlgmr.msra.gmra.mxu0 %vm444_vm0, %v432_v9  ;;  %1157 = vmatmul.mubr.msk.f32.vlgmr.msra.gmra.mxu1 %vm444_vm0, %v536_v10 }
  0x84   : > { %1172 = vmatprep.mubr.msk.f32.mxu1 %vm1528_vm1, %v1527_v0  ;;  %1167 = vmatprep.mubr.msk.f32.mxu0 %vm1528_vm1, %v1527_v0 }
  0x85   : > { %1160 = vmatpush3.xpose.msk.msra.mxu0 %vm444_vm0, %v637_v21 }
  0x86   : > { %1161 = vmatprep.subr.mxu0 %v1527_v0 }
  0x89   : > { %1162 = vmatpush3.xpose.msk.msra.mxu0 %vm444_vm0, %v636_v23 }
  0x8a   : > { %1163 = vmatprep.subr.mxu0 %v1527_v0 }
  0x8d   : > { %1164 = vmatpush3.xpose.msk.msra.mxu0 %vm444_vm0, %v635_v24 }
  0x8e   : > { %1165 = vmatprep.subr.mxu0 %v1527_v0 }
  0x91   : > { %1166 = vmatpush3.xpose.msk.msra.mxu0 %vm444_vm0, %v634_v25 }
  0x94   : > { %1168 = vmatmul.mubr.msk.f32.vlgmr.msra.gmra.mxu0 %vm444_vm0, %v536_v10 }
 0x143   : > { %v526_v13 = vpop.f32.mrf.mxu0  ;;  %v630_v14 = vpop.f32.mrf.mxu1 }
 0x144   : > { %v527_v15 = vadd.f32 %v1093_v11, %v526_v13  ;;  %v631_v16 = vadd.f32 %v1099_v12, %v630_v14 }
 0x145   : > { %v1147_v17 = vpop.f32.mrf.mxu0  ;;  %v1158_v18 = vpop.f32.mrf.mxu1 }
 0x146   : > { %v530_v19 = vmul.f32 0.17677669, %v527_v15  ;;  %1171 = vmatpush3.xpose.msk.msra.mxu1 %vm444_vm0, %v631_v16 }
 0x147   : > { %1175 = vmatprep.subr.mxu1 %v1527_v0 }
 0x148   : > { %531 = vst.msk [vmem:[#allocation2] sm:$0xff] %vm444_vm0, %v530_v19 }
 0x14f   : > { %v727_v20 = vld [vmem:[#allocation2] sm:$0xff] }
 0x150   : > { %1173 = vmatmul.mubr.msk.f32.vlgmr.msra.gmra.mxu1 %vm444_vm0, %v727_v20 }
 0x151   : > { %1177 = vmatprep.mubr.msk.f32.mxu1 %vm1528_vm1, %v1527_v0 }
 0x154   : > { %v723_v35 = vpop.f32.mrf.mxu0 }
 0x155   : > { %v724_v36 = vadd.f32 %v1105_v34, %v723_v35 }
 0x156   : > { %v1169_v37 = vpop.f32.mrf.mxu0 }
 0x157   : > { %1176 = vmatpush3.msra.mxu1 %v724_v36 }
 0x210   : > { %v800_v26 = vpop.f32.mrf.mxu1 }
 0x211   : > { %v806_v27 = vsel %vm805_vm3, %v800_v26, -inf }
 0x212   : > { %807 = vmax.xlane.f32.xlu0 %v806_v27  ;;  %v1174_v28 = vpop.f32.mrf.mxu1 }
 0x29b   : > { %v808_v31 = vpop.xlane.xlu0 %807 }
 0x29c   : > { %v809_v32 = vmax.f32 %v804_v30, %v808_v31 }
 0x29e   : > { %v810_v33 = vsub.f32 %v804_v30, %v809_v32  ;;  %911 = vst.msk [vmem:[#allocation3] sm:$0xff] %vm532_vm2, %v809_v32  ;;  %815 = vperm.xlu0 %1284, %v809_v32  }
 0x2a0   : > { %v811_v42 = vmul.f32 1.442695, %v810_v33 }
 0x319   : > { %v816_v38 = vpop.permute.xlu0 %815 }
 0x31a   : > { %v818_v39 = vsub.f32 %v800_v26, %v816_v38 }
 0x31c   : > { %v819_v40 = vmul.f32 1.442695, %v818_v39 }
 0x31e   : > { %1286 = vpow2.f32 %v819_v40 }
 0x31f   : > { %1288 = vpow2.f32 %v811_v42 }
 0x32b   : > { %v1287_v41 = vpop.eup %1286 }
 0x32c   : > { %1178 = vmatmul.mubr.msk.f32.vlgmr.msra.gmra.mxu1 %vm805_vm3, %v1287_v41  ;;  %v823_v43 = vsel %vm805_vm3, %v1287_v41, 0.0  ;;  %v1289_v44 = vpop.eup %1288 }
 0x32d   : > { %824 = vadd.xlane.f32.xlu1 %v823_v43  ;;  %v822_v46 = vmul.f32 %v1289_v44, %v821_v45 }
 0x33e   : > { %832 = vperm.xlu1 %1285, %v1289_v44  }
 0x3b6   : > { %v825_v47 = vpop.xlane.xlu1 %824 }
 0x3b7   : > { %v826_v48 = vadd.f32 %v825_v47, %v822_v46 }
 0x3b9   : > { %828 = vst.msk [vmem:[#allocation4] sm:$0xff] %vm532_vm2, %v826_v48 }
 0x3ba   : > { %v833_v52 = vpop.permute.xlu1 %832 }
 0x3bb   : > { %v835_v53 = vmul.f32 %v833_v52, %v829_v51 }
 0x3c0   : > { %v915_v49 = vld [vmem:[#allocation4] sm:$0xff] }
 0x3c1   : > { %1290 = vrcp.f32 %v915_v49 }
 0x3ce   : > { %v1291_v50 = vpop.eup %1290 }
 0x3cf   : > { %920 = vperm.xlu1 %1285, %v1291_v50  }
 0x3ec   : > { %v905_v54 = vpop.f32.mrf.mxu1 }
 0x3ed   : > { %v909_v55 = vadd.f32 %v905_v54, %v835_v53 }
 0x3ee   : > { %v1179_v56 = vpop.f32.mrf.mxu1 }
 0x3ef   : > { %910 = vst.msk [vmem:[#allocation5] sm:$0xff] %vm444_vm0, %v909_v55 }
 0x3f6   : > { %v917_v58 = vld [vmem:[#allocation5] sm:$0xff] }
 0x44a   : > { %v921_v57 = vpop.permute.xlu1 %920 }
 0x44b   : > { %v923_v59 = vmul.f32 %v921_v57, %v917_v58 }
 0x44d   : > { %924 = vst.msk [vmem:[%s427_s24] sm:$0xff] %vm444_vm0, %v923_v59 }
 0x44e   : > { %1439 = shalt.err (!%p1436_p2)
}
 0x44f   : > { %s1440_s19 = scalar_lea.hbm %s938_s22, 128  ;;  %s1444_s13 = scalar_lea.hbm %s1859_s8, 256 }
 0x450   : > { %p1441_p4 = scmp.ne.s32.totalorder %s938_s22, %s1440_s19  ;;  %p1445_p7 = scmp.lt.s32.totalorder %s938_s22, %s1859_s8 }
 0x451   : > { %p1446_p6 = scmp.lt.s32.totalorder %s1444_s13, %s1440_s19 }
 0x452   : > { %p1442_p1 = pnand %p1441_p4, %p1673_p5 }
 0x453   : > { %p1447_p12 = por %p1446_p6, %p1445_p7 }
 0x454   : > { %p1443_p8 = pneg %p1442_p1 }
 0x456   : > { %p1448_p0 = pnand %p1447_p12, %p1443_p8 }
 0x458   : > { %1451 = shalt.err (!%p1448_p0)
}
 0x459   : > { %1196 = dma.vmem_to_hbm [thread:$0]  (%p1673_p5), %s941_s17, 128, %s938_s22, %s926_s23  }
 0x45a PF: > { %s1886_s4 = sld [smem:[#allocation21_spill]]  ;;  %s952_s14 = sand.u32 1, %s1498_s27  }
 0x45b   : > { %p1888_p10 = scmp.ge.s32.totalorder %s1518_s10, 2  ;;  %s953_s16 = scalar_lea.sflag [#allocation8], %s952_s14 }
 0x460   : > { %p1887_p3 = scmp.ne.s32.totalorder %s1886_s4, 0 }
 0x462   : > { %p1216_p11 = pnand %p1888_p10, %p1887_p3 }
 0x464   : > { %p1217_p9 = pneg %p1216_p11 }
 0x466   : > { %1493 = dma.done.wait (%p1217_p9), %s953_s16, 128  }
 0x467   : > { %1495 = vsyncadd (%p1217_p9), %s953_s16, 4294967168  ;;  %s28_s10 = sadd.s32 1, %s1518_s10   ;;  %s1889_s18 = sld [smem:[#allocation22_spill]] }
 0x468   : > { %p25_p13 = scmp.ge.s32.totalorder %s28_s10, 4   ;;  %s1890_s27 = smov %s1502_s28 }
 0x469   : > { %s1891_s28 = smov %s1506_s29  ;;  %s1892_s29 = smov %s1685_s25 }
 0x46a   : > { %s1893_s30 = smov %s1514_s9  ;;  %27 = sbr.rel (!%p25_p13) target bundleno = 14 (0xe), region = 130 }
 0x46d   : > { %s1894_s9 = smov %s1889_s18 }
 0x46f   :  { %958 = vsyncpa [#allocation7], 1 }
 0x470   :  { %960 = vsyncpa [#allocation7 + $0x1], 1 }
 0x471   :  { %961 = vsyncpa [#allocation10], 1 }
 0x472   :  { %963 = vsyncpa [#allocation10 + $0x1], 1 }
 0x473   :  { %964 = vsyncpa [#allocation13], 1 }
 0x474   :  { %965 = vsyncpa [#allocation8], 1 }
 0x475   :  { %967 = vsyncpa [#allocation8 + $0x1], 1 }

</bundles_post_ra>
